<compile_context>
chip_gen: v7x
topology: tpu7x:2x2x1
jax: 0.10.0
libtpu: 0.0.40
codegen_flags: <defaults>
</compile_context>

<pallas_src>
import jax
import jax.numpy as jnp
import numpy as np
from jax.experimental import pallas as pl
from jax.experimental.pallas import tpu as pltpu

KSIZES = (3, 4, 5)      # nn.ModuleList([Conv1d(C, H, kernel_size=k) for k in [3, 4, 5]])
NEG_INF = -1e30         # finite "-inf" used to mask invalid pool positions


def textcnn_kernel(x_ref, w_pack_ref, pos_mask_ref, b_pack_ref, wfc_ref, bfc_ref,
                   out_ref):
    """Fused TextCNN forward for one (TB, L, C) batch tile.

    All conv branches are evaluated with a single im2col MXU matmul against a
    zero-padded packed weight (kmax*C, 3H_pad); conv bias + ReLU run after the
    global max-pool (exact: both are monotone and position-independent).
    """
    x = x_ref[...]                                        # (TB, L, C) f32
    TB, L, C = x.shape
    KC, NP = w_pack_ref.shape                             # kmax*C, 3H padded to 128 lanes
    kmax = KC // C

    # Shared kmax-tap im2col window via XLU sublane rotates (no unaligned
    # sublane slices): win[:, p, s*C:(s+1)*C] = x[:, (p + s) % L, :].  Rows that
    # wrap around / fall in the L padding only ever land on positions the
    # per-branch mask removes before the max-pool, and taps s >= k hit zero
    # weight rows for that branch.
    shifted = [x] + [pltpu.roll(x, shift=L - s, axis=1) for s in range(1, kmax)]
    win = jnp.concatenate(shifted, axis=-1)               # (TB, L, kmax*C) f32

    # One MXU push for all three branches: M = TB*L, bf16 operands, f32 accumulate.
    win2d = win.reshape(TB * L, KC).astype(w_pack_ref.dtype)
    h = jnp.dot(win2d, w_pack_ref[...],
                preferred_element_type=jnp.float32)       # (TB*L, NP) f32
    # Mask per-branch invalid tail positions (and the L padding) to -1e30.
    h = h.reshape(TB, L, NP) + pos_mask_ref[...]

    pooled = jnp.max(h, axis=1)                           # global max-pool  (TB, NP)
    feat = jnp.maximum(pooled + b_pack_ref[...], 0.0)     # bias + ReLU after the pool

    # Dropout is identity at inference.  The FC head is tiny, so it stays f32;
    # zero-padded rows/cols keep the (TB, NC_pad) store lane-dense and exact.
    logits = jnp.dot(feat, wfc_ref[...],
                     preferred_element_type=jnp.float32) + bfc_ref[...]
    out_ref[...] = jax.nn.sigmoid(logits).astype(out_ref.dtype)


def _pick_batch_tile(B, L_pad, C, kmax, n_conv_pad):
    """Batch tile: as large as fits a conservative VMEM budget (v7x: 64 MiB/TC),
    and >=2 grid steps once the batch is big enough to shard across v7x's two
    TensorCores.  Small batches run as one block (best on single-TC v5e/v6e)."""
    bytes_per_row = (2 * L_pad * C * 4                 # x tile, double-buffered
                     + L_pad * kmax * C * (4 + 2)      # f32 window + bf16 MXU copy
                     + L_pad * n_conv_pad * 4)         # f32 conv-matmul output
    vmem_max = max(8, int((40 << 20) // bytes_per_row) // 8 * 8)
    if B < 16:
        return B
    half = pl.cdiv(B, 16) * 8                          # ~B/2 rounded up to a multiple of 8
    return min(vmem_max, half)


def textcnn_forward(x, mask, params, *, batch_tile=None):
    """TextCNN forward.  x: (B, L, len_word) channels-last (the caller layout
    before the module's in-place transpose).  `mask` is accepted but unused,
    exactly like the reference module."""
    del mask
    conv_params, (w_fc, b_fc) = params
    ksizes = tuple(int(w.shape[2]) for w, _ in conv_params)
    H = int(conv_params[0][0].shape[0])
    B, L, C = x.shape
    NC = int(w_fc.shape[0])
    kmax = max(ksizes)
    assert L >= kmax, "sequence length must cover the largest conv kernel"

    # ---- host-side packing into the kernel layout (tiny; folds into outer jit) ----
    n_conv = len(ksizes) * H
    NP = 128 * pl.cdiv(n_conv, 128)        # lane-dense conv output width
    NC_pad = 128 * pl.cdiv(NC, 128)        # lane-dense kernel output width
    L_pad = 8 * pl.cdiv(L, 8)              # sublane-aligned position count

    w_pack = jnp.zeros((kmax * C, NP), jnp.float32)
    b_pack = jnp.zeros((1, NP), jnp.float32)
    for i, ((w, b), k) in enumerate(zip(conv_params, ksizes)):
        # torch Conv1d weight (H, C, k) -> im2col rows indexed by kk*C + c.
        w_pack = w_pack.at[:k * C, i * H:(i + 1) * H].set(
            jnp.transpose(w, (2, 1, 0)).reshape(k * C, H))
        b_pack = b_pack.at[0, i * H:(i + 1) * H].set(b)
    w_pack = w_pack.astype(jnp.bfloat16)               # bf16 MXU operand (f32 accumulate)

    wfc_p = jnp.zeros((NP, NC_pad), jnp.float32).at[:n_conv, :NC].set(w_fc.T)
    bfc_p = jnp.zeros((1, NC_pad), jnp.float32).at[0, :NC].set(b_fc)

    # Position p is valid for kernel size k iff p <= L - k; everything else
    # (per-branch tails + the L padding) gets -1e30 before the max-pool.
    pos_mask = np.zeros((L_pad, NP), np.float32)
    for i, k in enumerate(ksizes):
        pos_mask[L - k + 1:, i * H:(i + 1) * H] = NEG_INF
    pos_mask = jnp.asarray(pos_mask)

    # ---- batch tiling: pad B to a tile multiple (no silent 1-step fallback) ----
    TB = batch_tile if batch_tile is not None else _pick_batch_tile(B, L_pad, C, kmax, NP)
    B_pad = TB * pl.cdiv(B, TB)
    x_p = jnp.pad(x.astype(jnp.float32), ((0, B_pad - B), (0, L_pad - L), (0, 0)))
    # TODO(synk): at large B/L store x in HBM as bf16 (halves the input DMA); the
    # window build then needs bf16 sublane rotates or an in-kernel upcast.

    grid = (B_pad // TB,)
    # Raise the scoped VMEM limit only when the working set needs it (defaults:
    # 16 MiB on v5e, 32 MiB on v6e/v7x; v7x physical VMEM is 64 MiB per TC).
    est_bytes = (2 * TB * L_pad * C * 4 + TB * L_pad * kmax * C * 6
                 + TB * L_pad * NP * 4 + w_pack.size * 2 + wfc_p.size * 4
                 + pos_mask.size * 4 + 2 * TB * NC_pad * 4 + (1 << 20))
    vmem_limit = None if est_bytes <= (16 << 20) else min(
        max(est_bytes + est_bytes // 4, 32 << 20), 56 << 20)

    out_p = pl.pallas_call(
        textcnn_kernel,
        out_shape=jax.ShapeDtypeStruct((B_pad, NC_pad), jnp.float32),
        grid=grid,
        in_specs=[
            # x: tiled over batch.  If profiling shows exposed x DMA at small TB,
            # add pipeline_mode=pl.Buffered(3) on this spec.
            pl.BlockSpec((TB, L_pad, C), lambda b: (b, 0, 0)),
            pl.BlockSpec(w_pack.shape, lambda b: (0, 0)),    # weights stay resident
            pl.BlockSpec(pos_mask.shape, lambda b: (0, 0)),
            pl.BlockSpec(b_pack.shape, lambda b: (0, 0)),
            pl.BlockSpec(wfc_p.shape, lambda b: (0, 0)),
            pl.BlockSpec(bfc_p.shape, lambda b: (0, 0)),
        ],
        out_specs=pl.BlockSpec((TB, NC_pad), lambda b: (b, 0)),
        compiler_params=pltpu.CompilerParams(
            dimension_semantics=("parallel",),   # shards grid steps across v7x's 2 TCs
            vmem_limit_bytes=vmem_limit),
    )(x_p, w_pack, pos_mask, b_pack, wfc_p, bfc_p)

    return out_p[:B, :NC]                                  # (B, num_classes)


def init_params(key, len_word, hidden_size, num_classes, ksizes=KSIZES):
    """Parameters in the PyTorch layout with the PyTorch default
    U(-1/sqrt(fan_in), +1/sqrt(fan_in)) init:
      conv[i].weight (H, C, k), conv[i].bias (H,), fc.weight (NC, 3H), fc.bias (NC,)."""
    keys = jax.random.split(key, 2 * len(ksizes) + 2)
    conv_params = []
    for i, k in enumerate(ksizes):
        bound = 1.0 / float(np.sqrt(len_word * k))
        w = jax.random.uniform(keys[2 * i], (hidden_size, len_word, k),
                               jnp.float32, -bound, bound)
        b = jax.random.uniform(keys[2 * i + 1], (hidden_size,),
                               jnp.float32, -bound, bound)
        conv_params.append((w, b))
    fan_in = hidden_size * len(ksizes)
    bound = 1.0 / float(np.sqrt(fan_in))
    w_fc = jax.random.uniform(keys[-2], (num_classes, fan_in), jnp.float32, -bound, bound)
    b_fc = jax.random.uniform(keys[-1], (num_classes,), jnp.float32, -bound, bound)
    return conv_params, (w_fc, b_fc)


def reference_forward(x, params):
    """Pure-jnp mirror of the PyTorch forward (f32, Precision.HIGHEST)."""
    conv_params, (w_fc, b_fc) = params
    feats = []
    for w, b in conv_params:
        k = int(w.shape[2])
        L_out = x.shape[1] - k + 1
        # Conv1d (cross-correlation) on NCW input == windowed einsum on (B, L, C).
        win = jnp.stack([x[:, s:s + L_out, :] for s in range(k)], axis=-1)  # (B, L_out, C, k)
        h = jnp.einsum("blck,hck->blh", win, w,
                       precision=jax.lax.Precision.HIGHEST) + b
        feats.append(jnp.max(jnp.maximum(h, 0.0), axis=1))   # ReLU then global max-pool
    feat = jnp.concatenate(feats, axis=-1)                    # torch.cat(..., dim=1)
    logits = jnp.dot(feat, w_fc.T, precision=jax.lax.Precision.HIGHEST) + b_fc
    return jax.nn.sigmoid(logits)


if __name__ == "__main__":
    B, L, len_word, hidden_size, num_classes = 2, 16, 16, 32, 4

    key = jax.random.PRNGKey(0)
    kx, kp = jax.random.split(key)
    x = jax.random.normal(kx, (B, L, len_word), jnp.float32)   # (B, seq, len_word)
    mask = jnp.ones((B, L), jnp.float32)                       # unused, mirrors torch signature
    params = init_params(kp, len_word, hidden_size, num_classes)

    out = textcnn_forward(x, mask, params)
    out = jax.block_until_ready(out)

    assert out.shape == (B, num_classes)
    assert bool(jnp.all(jnp.isfinite(out)))
    assert bool(jnp.all((out >= 0.0) & (out <= 1.0)))          # sigmoid range sanity
    ref = reference_forward(x, params)
    # bf16 MXU operands (f32 accumulate) vs a Precision.HIGHEST f32 reference.
    assert bool(jnp.allclose(out, ref, rtol=2e-2, atol=2e-2)), "mismatch vs jnp reference"
    print("KERNEL_OK")
</pallas_src>

<mosaic_0001>
module attributes {stable_mosaic.version = 11 : i64} {
  func.func @textcnn_kernel(%arg0: i32, %arg1: memref<2x16x16xf32, #tpu.memory_space<vmem>>, %arg2: memref<80x128xbf16, #tpu.memory_space<vmem>>, %arg3: memref<16x128xf32, #tpu.memory_space<vmem>>, %arg4: memref<1x128xf32, #tpu.memory_space<vmem>>, %arg5: memref<128x128xf32, #tpu.memory_space<vmem>>, %arg6: memref<1x128xf32, #tpu.memory_space<vmem>>, %arg7: memref<2x128xf32, #tpu.memory_space<vmem>>) attributes {dimension_semantics = [#tpu.dimension_semantics<parallel>], iteration_bounds = array<i64: 1>, scalar_prefetch = 0 : i64, scratch_operands = 0 : i64, tpu.core_type = #tpu.core_type<tc>, window_params = [{transform_indices = @transform_0, window_bounds = array<i64: 2, 16, 16>}, {pipeline_mode = #tpu.pipeline_mode<synchronous>, transform_indices = @transform_1, window_bounds = array<i64: 80, 128>}, {pipeline_mode = #tpu.pipeline_mode<synchronous>, transform_indices = @transform_2, window_bounds = array<i64: 16, 128>}, {pipeline_mode = #tpu.pipeline_mode<synchronous>, transform_indices = @transform_3, window_bounds = array<i64: 1, 128>}, {pipeline_mode = #tpu.pipeline_mode<synchronous>, transform_indices = @transform_4, window_bounds = array<i64: 128, 128>}, {pipeline_mode = #tpu.pipeline_mode<synchronous>, transform_indices = @transform_5, window_bounds = array<i64: 1, 128>}, {transform_indices = @transform_6, window_bounds = array<i64: 2, 128>}]} {
    %c0 = arith.constant 0 : index
    %c0_0 = arith.constant 0 : index
    %c0_1 = arith.constant 0 : index
    %0 = vector.load %arg1[%c0, %c0_0, %c0_1] : memref<2x16x16xf32, #tpu.memory_space<vmem>>, vector<2x16x16xf32>
    %c15_i32 = arith.constant 15 : i32
    %1 = tpu.dynamic_rotate %0 by %c15_i32 dim 1 : vector<2x16x16xf32>, i32 -> vector<2x16x16xf32>
    %c14_i32 = arith.constant 14 : i32
    %2 = tpu.dynamic_rotate %0 by %c14_i32 dim 1 : vector<2x16x16xf32>, i32 -> vector<2x16x16xf32>
    %c13_i32 = arith.constant 13 : i32
    %3 = tpu.dynamic_rotate %0 by %c13_i32 dim 1 : vector<2x16x16xf32>, i32 -> vector<2x16x16xf32>
    %c12_i32 = arith.constant 12 : i32
    %4 = tpu.dynamic_rotate %0 by %c12_i32 dim 1 : vector<2x16x16xf32>, i32 -> vector<2x16x16xf32>
    %5 = tpu.concatenate %0, %1, %2, %3, %4 in 2 : vector<2x16x16xf32>, vector<2x16x16xf32>, vector<2x16x16xf32>, vector<2x16x16xf32>, vector<2x16x16xf32> -> vector<2x16x80xf32>
    %6 = vector.shape_cast %5 : vector<2x16x80xf32> to vector<32x80xf32>
    %7 = arith.truncf %6 : vector<32x80xf32> to vector<32x80xbf16>
    %c0_2 = arith.constant 0 : index
    %c0_3 = arith.constant 0 : index
    %8 = vector.load %arg2[%c0_2, %c0_3] : memref<80x128xbf16, #tpu.memory_space<vmem>>, vector<80x128xbf16>
    %cst = arith.constant dense<0.000000e+00> : vector<32x128xf32>
    %9 = tpu.matmul %7, %8, %cst {dimension_numbers = #tpu.dot_dimension_numbers<[1], [0], [0], [1], [0, 0, 1, 1], [], []>} : vector<32x80xbf16>, vector<80x128xbf16>, vector<32x128xf32> -> vector<32x128xf32>
    %10 = vector.shape_cast %9 : vector<32x128xf32> to vector<2x16x128xf32>
    %c0_4 = arith.constant 0 : index
    %c0_5 = arith.constant 0 : index
    %11 = vector.load %arg3[%c0_4, %c0_5] : memref<16x128xf32, #tpu.memory_space<vmem>>, vector<16x128xf32>
    %12 = vector.shape_cast %11 : vector<16x128xf32> to vector<1x16x128xf32>
    %13 = vector.broadcast %12 : vector<1x16x128xf32> to vector<2x16x128xf32>
    %14 = arith.addf %10, %13 : vector<2x16x128xf32>
    %cst_6 = arith.constant dense<0xFF800000> : vector<2x128xf32>
    %15 = vector.multi_reduction <maximumf>, %14, %cst_6 [1] : vector<2x16x128xf32> to vector<2x128xf32>
    %c0_7 = arith.constant 0 : index
    %c0_8 = arith.constant 0 : index
    %16 = vector.load %arg4[%c0_7, %c0_8] : memref<1x128xf32, #tpu.memory_space<vmem>>, vector<1x128xf32>
    %17 = vector.broadcast %16 : vector<1x128xf32> to vector<2x128xf32>
    %18 = arith.addf %15, %17 : vector<2x128xf32>
    %cst_9 = arith.constant 0.000000e+00 : f32
    %19 = vector.broadcast %cst_9 : f32 to vector<2x128xf32>
    %20 = arith.maximumf %18, %19 : vector<2x128xf32>
    %c0_10 = arith.constant 0 : index
    %c0_11 = arith.constant 0 : index
    %21 = vector.load %arg5[%c0_10, %c0_11] : memref<128x128xf32, #tpu.memory_space<vmem>>, vector<128x128xf32>
    %cst_12 = arith.constant dense<0.000000e+00> : vector<2x128xf32>
    %22 = tpu.matmul %20, %21, %cst_12 {dimension_numbers = #tpu.dot_dimension_numbers<[1], [0], [0], [1], [0, 0, 1, 1], [], []>} : vector<2x128xf32>, vector<128x128xf32>, vector<2x128xf32> -> vector<2x128xf32>
    %c0_13 = arith.constant 0 : index
    %c0_14 = arith.constant 0 : index
    %23 = vector.load %arg6[%c0_13, %c0_14] : memref<1x128xf32, #tpu.memory_space<vmem>>, vector<1x128xf32>
    %24 = vector.broadcast %23 : vector<1x128xf32> to vector<2x128xf32>
    %25 = arith.addf %22, %24 : vector<2x128xf32>
    %26 = arith.negf %25 : vector<2x128xf32>
    %27 = math.exp %26 : vector<2x128xf32>
    %cst_15 = arith.constant 1.000000e+00 : f32
    %28 = vector.broadcast %cst_15 : f32 to vector<2x128xf32>
    %29 = arith.addf %28, %27 : vector<2x128xf32>
    %30 = arith.divf %28, %29 : vector<2x128xf32>
    %c0_16 = arith.constant 0 : index
    %c0_17 = arith.constant 0 : index
    %31 = vector.load %arg7[%c0_16, %c0_17] : memref<2x128xf32, #tpu.memory_space<vmem>>, vector<2x128xf32>
    tpu.vector_store %arg7[%c0_16, %c0_17], %30 {strides = array<i32>} : memref<2x128xf32, #tpu.memory_space<vmem>>, vector<2x128xf32>,
    return
  }
  func.func @transform_0(%arg0: i32) -> (i32, i32, i32) {
    %c0_i32 = arith.constant 0 : i32
    %c0_i32_0 = arith.constant 0 : i32
    %c0_i32_1 = arith.constant 0 : i32
    return %arg0, %c0_i32, %c0_i32_0 : i32, i32, i32
  }
  func.func @transform_1(%arg0: i32) -> (i32, i32) {
    %c0_i32 = arith.constant 0 : i32
    %c0_i32_0 = arith.constant 0 : i32
    %c0_i32_1 = arith.constant 0 : i32
    return %c0_i32, %c0_i32_0 : i32, i32
  }
  func.func @transform_2(%arg0: i32) -> (i32, i32) {
    %c0_i32 = arith.constant 0 : i32
    %c0_i32_0 = arith.constant 0 : i32
    %c0_i32_1 = arith.constant 0 : i32
    return %c0_i32, %c0_i32_0 : i32, i32
  }
  func.func @transform_3(%arg0: i32) -> (i32, i32) {
    %c0_i32 = arith.constant 0 : i32
    %c0_i32_0 = arith.constant 0 : i32
    %c0_i32_1 = arith.constant 0 : i32
    return %c0_i32, %c0_i32_0 : i32, i32
  }
  func.func @transform_4(%arg0: i32) -> (i32, i32) {
    %c0_i32 = arith.constant 0 : i32
    %c0_i32_0 = arith.constant 0 : i32
    %c0_i32_1 = arith.constant 0 : i32
    return %c0_i32, %c0_i32_0 : i32, i32
  }
  func.func @transform_5(%arg0: i32) -> (i32, i32) {
    %c0_i32 = arith.constant 0 : i32
    %c0_i32_0 = arith.constant 0 : i32
    %c0_i32_1 = arith.constant 0 : i32
    return %c0_i32, %c0_i32_0 : i32, i32
  }
  func.func @transform_6(%arg0: i32) -> (i32, i32) {
    %c0_i32 = arith.constant 0 : i32
    %c0_i32_0 = arith.constant 0 : i32
    return %arg0, %c0_i32 : i32, i32
  }
}

</mosaic_0001>

<bundles_post_ra>
// kernel: tpu_custom_call.1
= control target key start
LH: loop header
LB: loop body
LE: loop exit
PB: predicated region body
PF: predicated region fallthrough
CT: control target
= control target key end

     0   :  { %11 = vsyncpa [#allocation3], 0  ;;  %s971_s0 = inlined_call_operand.hbm [shape: f32[2,16,16], index: 0, kind: input, shape index: {}]   ;;  %s972_s1 = inlined_call_operand.hbm [shape: bf16[80,128], index: 1, kind: input, shape index: {}]   ;;  %s973_s2 = inlined_call_operand.hbm [shape: f32[16,128], index: 2, kind: input, shape index: {}]   ;;  %s974_s3 = inlined_call_operand.vmem [shape: f32[1,128], index: 3, kind: input, shape index: {}]   ;;  %s975_s4 = inlined_call_operand.hbm [shape: f32[128,128], index: 4, kind: input, shape index: {}]   ;;  %s976_s5 = inlined_call_operand.vmem [shape: f32[1,128], index: 5, kind: input, shape index: {}]   ;;  %s977_s6 = inlined_call_operand.hbm [shape: f32[2,128], index: 6, kind: output, shape index: {}]  }
   0x1   :  { %12 = vsyncpa [#allocation6], 0 }
   0x2   :  { %13 = vsyncpa [#allocation9], 0 }
   0x3   :  { %14 = vsyncpa [#allocation4], 0  ;;  %s747_s21 = smov [#allocation5]   ;;  %s629_s25 = scalar_lea.hbm %s972_s1, 640 }
   0x4   :  { %s32_s22 = sshll.u32 %s747_s21, 4  ;;  %p630_p0 = scmp.ne.s32.totalorder %s972_s1, %s629_s25  ;;  %s33_s22 = int_to_ptr.vmem [resolvable:$true] %s32_s22 }
   0x5   :  { %p633_p1 = scmp.lt.u32.totalorder %s629_s25, %s972_s1 }
   0x7   :  { %p635_p2 = pnand %p633_p1, %p630_p0 }
   0x9   :  { %638 = shalt.err (!%p635_p2)
}
   0xa   :  { %s639_s30 = scalar_lea.vmem %s33_s22, 640  ;;  %p644_p4 = scmp.lt.s32.totalorder %s33_s22, %s33_s22 }
   0xb   :  { %p640_p3 = scmp.ne.s32.totalorder %s33_s22, %s639_s30  ;;  %p645_p5 = scmp.lt.s32.totalorder %s639_s30, %s639_s30 }
   0xd   :  { %p646_p6 = por %p645_p5, %p644_p4 }
   0xf   :  { %p647_p7 = pnand %p646_p6, %p640_p3 }
  0x11   :  { %650 = shalt.err (!%p647_p7)
}
  0x12   :  { %s748_s7 = smov 64   ;;  %s749_s8 = smov 4  }
  0x13   :  { %38 = dma.hbm_to_vmem [thread:$0]  %s972_s1, 640, %s33_s22, [#allocation6], %s748_s7, %s748_s7, %s749_s8  }
  0x14   :  { %s750_s11 = smov [#allocation2]   ;;  %s651_s15 = scalar_lea.hbm %s971_s0, 512 }
  0x15   :  { %s20_s12 = sshll.u32 %s750_s11, 4  ;;  %p652_p8 = scmp.ne.s32.totalorder %s971_s0, %s651_s15  ;;  %s21_s12 = int_to_ptr.vmem [resolvable:$true] %s20_s12 }
  0x16   :  { %p655_p9 = scmp.lt.u32.totalorder %s651_s15, %s971_s0 }
  0x18   :  { %p657_p10 = pnand %p655_p9, %p652_p8 }
  0x1a   :  { %660 = shalt.err (!%p657_p10)
}
  0x1b   :  { %s661_s20 = scalar_lea.vmem %s21_s12, 512  ;;  %p666_p12 = scmp.lt.s32.totalorder %s21_s12, %s21_s12 }
  0x1c   :  { %p662_p11 = scmp.ne.s32.totalorder %s21_s12, %s661_s20  ;;  %p667_p13 = scmp.lt.s32.totalorder %s661_s20, %s661_s20 }
  0x1e   :  { %p668_p0 = por %p667_p13, %p666_p12 }
  0x20   :  { %p669_p1 = pnand %p668_p0, %p662_p11 }
  0x22   :  { %672 = shalt.err (!%p669_p1)
}
  0x23   :  { %s751_s1 = smov 128   ;;  %s752_s21 = smov 8  }
  0x24   :  { %26 = dma.hbm_to_vmem [thread:$0]  %s971_s0, 512, %s21_s12, [#allocation3], %s751_s1, %s751_s1, %s752_s21  }
  0x25   :  { %s753_s24 = smov [#allocation7]   ;;  %s754_s26 = smov [#allocation8]  }
  0x26   :  { %s44_s25 = sshll.u32 %s753_s24, 4  ;;  %s58_s27 = sshll.u32 %s754_s26, 4  ;;  %s45_s25 = int_to_ptr.vmem [resolvable:$true] %s44_s25  ;;  %s826_s27 = int_to_ptr.vmem [resolvable:$true] %s58_s27 }
  0x27   :  { %s673_s30 = scalar_lea.hbm %s973_s2, 256 }
  0x28   :  { %p674_p2 = scmp.ne.s32.totalorder %s973_s2, %s673_s30  ;;  %p677_p3 = scmp.lt.u32.totalorder %s673_s30, %s973_s2 }
  0x2a   :  { %p679_p4 = pnand %p677_p3, %p674_p2 }
  0x2c   :  { %682 = shalt.err (!%p679_p4)
}
  0x2d   :  { %s683_s0 = scalar_lea.vmem %s45_s25, 256  ;;  %p688_p6 = scmp.lt.s32.totalorder %s45_s25, %s45_s25 }
  0x2e   :  { %p684_p5 = scmp.ne.s32.totalorder %s45_s25, %s683_s0  ;;  %p689_p7 = scmp.lt.s32.totalorder %s683_s0, %s683_s0 }
  0x30   :  { %p690_p8 = por %p689_p7, %p688_p6 }
  0x32   :  { %p691_p9 = pnand %p690_p8, %p684_p5 }
  0x34   :  { %694 = shalt.err (!%p691_p9)
}
  0x35   :  { %50 = dma.hbm_to_vmem [thread:$0]  %s973_s2, 256, %s45_s25, [#allocation6], %s751_s1, %s751_s1, %s752_s21  }
  0x36   :  { %s695_s16 = scalar_lea.hbm %s975_s4, 2048 }
  0x37   :  { %p696_p10 = scmp.ne.s32.totalorder %s975_s4, %s695_s16  ;;  %p699_p11 = scmp.lt.u32.totalorder %s695_s16, %s975_s4 }
  0x39   :  { %p701_p12 = pnand %p699_p11, %p696_p10 }
  0x3b   :  { %704 = shalt.err (!%p701_p12)
}
  0x3c   :  { %s705_s22 = scalar_lea.vmem %s826_s27, 2048  ;;  %p710_p0 = scmp.lt.s32.totalorder %s826_s27, %s826_s27 }
  0x3d   :  { %p706_p13 = scmp.ne.s32.totalorder %s826_s27, %s705_s22  ;;  %p711_p1 = scmp.lt.s32.totalorder %s705_s22, %s705_s22 }
  0x3f   :  { %p712_p2 = por %p711_p1, %p710_p0 }
  0x41   :  { %p713_p3 = pnand %p712_p2, %p706_p13 }
  0x43   :  { %716 = shalt.err (!%p713_p3)
}
  0x44   :  { %64 = dma.hbm_to_vmem [thread:$0]  %s975_s4, 2048, %s826_s27, [#allocation9], %s751_s1, %s751_s1, %s752_s21  }
  0x45   :  { %739 = dma.done.wait [#allocation3], 512  }
  0x46   :  { %740 = vsyncadd [#allocation3], 4294966784 }
  0x47   :  { %741 = dma.done.wait [#allocation6], 896  }
  0x48   :  { %742 = vsyncadd [#allocation6], 4294966400 }
  0x49   :  { %743 = dma.done.wait [#allocation9], 2048  }
  0x4a   :  { %744 = vsyncadd [#allocation9], 4294965248  ;;  %v88_v0 = vlaneseq  ;;  %v866_v2 = vld [vmem:[#allocation2] sm:$0xff]  ;;  %v868_v3 = vld [vmem:[#allocation2 + $0x8] sm:$0xff]  ;;  %s755_s4 = smov 32   ;;  %s756_s1 = smov 16  }
  0x4b   :  { %v871_v4 = vld [vmem:[#allocation2 + $0x10] sm:$0xff]  ;;  %v95_v5 = vrot.slane %v866_v2, 2  ;;  %v97_v6 = vrot.slane %v868_v3, 2  ;;  %v84_v7 = vrot.slane %v866_v2, 1  ;;  %v86_v8 = vrot.slane %v868_v3, 1  ;;  %v879_v9 = vld [vmem:[#allocation2 + $0x18] sm:$0xff] }
  0x4c   :  { %v863_v1 = vshrl.u32 %v88_v0, 7  ;;  %v620_v10 = vld [vmem:[#allocation5] sm:$0xff]   ;;  %v96_v11 = vrot.slane %v871_v4, 2  ;;  %v98_v12 = vrot.slane %v879_v9, 2  ;;  %v85_v13 = vrot.slane %v871_v4, 1  ;;  %v621_v23 = vld [vmem:[#allocation5 + $0x8] sm:$0xff]  }
  0x4d   :  { %v87_v14 = vrot.slane %v879_v9, 1  ;;  %492 = vmatprep.subr.bf16.mxu0 %v620_v10  ;;  %v105_v27 = vrot.slane %v871_v4, 3  ;;  %v622_v28 = vld [vmem:[#allocation5 + $0x10] sm:$0xff]   ;;  %v107_v30 = vrot.slane %v879_v9, 3  ;;  %v104_v31 = vrot.slane %v866_v2, 3  ;;  %v623_v41 = vld [vmem:[#allocation5 + $0x18] sm:$0xff]  }
  0x4e   :  { %vm99_vm0 = vcmp.lt.s32.totalorder %v863_v1, 6  ;;  %vm90_vm1 = vcmp.lt.s32.totalorder %v863_v1, 7  ;;  %vm108_vm2 = vcmp.lt.s32.totalorder %v863_v1, 5  ;;  %vm117_vm3 = vcmp.lt.s32.totalorder %v863_v1, 4  ;;  %493 = vmatpush3.bf16.msra.mxu0 %v620_v10  ;;  %v335_v48 = vld [vmem:[#allocation8] sm:$0xff]  ;;  %v336_v49 = vld [vmem:[#allocation8 + $0x8] sm:$0xff] }
  0x4f   :  { %v100_v15 = vsel %vm99_vm0, %v95_v5, %v97_v6  ;;  %v102_v16 = vsel %vm99_vm0, %v97_v6, %v95_v5  ;;  %v91_v17 = vsel %vm90_vm1, %v84_v7, %v86_v8  ;;  %v93_v18 = vsel %vm90_vm1, %v86_v8, %v84_v7  ;;  %494 = vmatprep.subr.bf16.mxu0 %v621_v23  ;;  %v337_v52 = vld [vmem:[#allocation8 + $0x10] sm:$0xff]  ;;  %v338_v53 = vld [vmem:[#allocation8 + $0x18] sm:$0xff]  ;;  %v624_v54 = vld [vmem:[#allocation5 + $0x20] sm:$0xff]   ;;  %s758_s21 = smov 48  }
  0x50   :  { %v590_v19 = vpack.i.bf16 %v102_v16, %v100_v15  ;;  %v580_v20 = vpack.i.bf16 %v93_v18, %v91_v17  ;;  %v101_v21 = vsel %vm99_vm0, %v96_v11, %v98_v12  ;;  %v103_v22 = vsel %vm99_vm0, %v98_v12, %v96_v11 }
  0x51   :  { %v595_v24 = vpack.i.bf16 %v103_v22, %v101_v21  ;;  %v92_v25 = vsel %vm90_vm1, %v85_v13, %v87_v14  ;;  %v94_v26 = vsel %vm90_vm1, %v87_v14, %v85_v13  ;;  %v106_v32 = vrot.slane %v868_v3, 3 }
  0x52   :  { %591 = vrot.lane.b32.xlu1 %v590_v19, %s755_s4  ;;  %581 = vrot.lane.b32.xlu0 %v580_v20, %s756_s1  ;;  %v585_v29 = vpack.i.bf16 %v94_v26, %v92_v25  ;;  %v114_v33 = vrot.slane %v871_v4, 4  ;;  %v116_v34 = vrot.slane %v879_v9, 4  ;;  %v113_v35 = vrot.slane %v866_v2, 4 }
  0x53   :  { %v115_v36 = vrot.slane %v868_v3, 4  ;;  %v110_v37 = vsel %vm108_vm2, %v105_v27, %v107_v30  ;;  %v112_v38 = vsel %vm108_vm2, %v107_v30, %v105_v27  ;;  %v109_v39 = vsel %vm108_vm2, %v104_v31, %v106_v32  ;;  %495 = vmatpush3.bf16.msra.mxu0 %v621_v23 }
  0x54   :  { %v111_v40 = vsel %vm108_vm2, %v106_v32, %v104_v31  ;;  %496 = vmatprep.subr.bf16.mxu0 %v622_v28  ;;  %v605_v42 = vpack.i.bf16 %v112_v38, %v110_v37  ;;  %v119_v44 = vsel %vm117_vm3, %v114_v33, %v116_v34  ;;  %v121_v45 = vsel %vm117_vm3, %v116_v34, %v114_v33  ;;  %v340_v37 = vld [vmem:[#allocation8 + $0x28] sm:$0xff] }
  0x55   :  { %v600_v43 = vpack.i.bf16 %v111_v40, %v109_v39  ;;  %v118_v46 = vsel %vm117_vm3, %v113_v35, %v115_v36  ;;  %v120_v47 = vsel %vm117_vm3, %v115_v36, %v113_v35  ;;  %v757_v50 = vmov 0.0|0.0   ;;  %v339_v36 = vld [vmem:[#allocation8 + $0x20] sm:$0xff]  ;;  %v341_v39 = vld [vmem:[#allocation8 + $0x30] sm:$0xff]  ;;  %v342_v40 = vld [vmem:[#allocation8 + $0x38] sm:$0xff] }
  0x56   :  { %596 = vrot.lane.b32.xlu1 %v595_v24, %s755_s4  ;;  %586 = vrot.lane.b32.xlu0 %v585_v29, %s756_s1  ;;  %v542_v51 = vpack.c.bf16 %v336_v49, %v335_v48  ;;  %v615_v55 = vpack.i.bf16 %v121_v45, %v119_v44  ;;  %v610_v56 = vpack.i.bf16 %v120_v47, %v118_v46  ;;  %vm186_vm4 = vcmask 130048   ;;  %v345_v45 = vld [vmem:[#allocation8 + $0x50] sm:$0xff]  ;;  %v346_v46 = vld [vmem:[#allocation8 + $0x58] sm:$0xff]  ;;  %v347_v48 = vld [vmem:[#allocation8 + $0x60] sm:$0xff] }
  0x57   :  { %497 = vmatpush3.bf16.msra.mxu0 %v622_v28  ;;  %541 = vmatprep.subr.bf16.mxu1 %v757_v50  ;;  %v545_v57 = vpack.c.bf16 %v338_v53, %v337_v52  ;;  %vm191_vm5 = vcmask 261120   ;;  %vm196_vm6 = vcmask 392192   ;;  %vm201_vm7 = vcmask 523264   ;;  %v348_v49 = vld [vmem:[#allocation8 + $0x68] sm:$0xff]  ;;  %v349_v52 = vld [vmem:[#allocation8 + $0x70] sm:$0xff]  ;;  %v350_v53 = vld [vmem:[#allocation8 + $0x78] sm:$0xff] }
  0x58   :  { %498 = vmatprep.subr.bf16.mxu0 %v623_v41  ;;  %543 = vmatpush3.bf16.msra.mxu1 %v542_v51  ;;  %vm248_vm8 = vcmask 654336   ;;  %v548_v38 = vpack.c.bf16 %v340_v37, %v339_v36  ;;  %v557_v47 = vpack.c.bf16 %v346_v46, %v345_v45  ;;  %v560_v51 = vpack.c.bf16 %v348_v49, %v347_v48 }
  0x59   :  { %544 = vmatprep.subr.bf16.mxu1 %v757_v50  ;;  %vm759_vm9 = vmmov 0   ;;  %vm361_vm10 = vcmask 1041409  }
  0x5a   :  { %606 = vrot.lane.b32.xlu1 %v605_v42, %s758_s21  ;;  %601 = vrot.lane.b32.xlu0 %v600_v43, %s758_s21  ;;  %v343_v42 = vld [vmem:[#allocation8 + $0x40] sm:$0xff]  ;;  %v344_v43 = vld [vmem:[#allocation8 + $0x48] sm:$0xff] }
  0x5b   :  { %499 = vmatpush3.bf16.msra.mxu0 %v623_v41  ;;  %v551_v41 = vpack.c.bf16 %v342_v40, %v341_v39  ;;  %v554_v44 = vpack.c.bf16 %v344_v43, %v343_v42 }
  0x5c   :  { %500 = vmatprep.subr.bf16.mxu0 %v624_v54  ;;  %546 = vmatpush3.bf16.msra.mxu1 %v545_v57  ;;  %v304_v57 = vld [vmem:[#allocation7] sm:$0xff] }
  0x5d   :  { %547 = vmatprep.subr.bf16.mxu1 %v757_v50 }
  0x5e   :  { %616 = vrot.lane.b32.xlu1 %v615_v55, %s748_s7  ;;  %611 = vrot.lane.b32.xlu0 %v610_v56, %s748_s7  ;;  %v760_v55 = vmov 0.0  }
  0x5f   :  { %501 = vmatpush3.bf16.msra.mxu0 %v624_v54  ;;  %v563_v54 = vpack.c.bf16 %v350_v53, %v349_v52  ;;  %538 = vmatprep.mubr.msk.f32.mxu1 %vm759_vm9, %v760_v55 }
  0x60   :  { %549 = vmatpush3.bf16.msra.mxu1 %v548_v38 }
  0x61   :  { %550 = vmatprep.subr.bf16.mxu1 %v757_v50 }
  0x64   :  { %552 = vmatpush3.bf16.msra.mxu1 %v551_v41 }
  0x65   :  { %553 = vmatprep.subr.bf16.mxu1 %v757_v50 }
  0x68   :  { %555 = vmatpush3.bf16.msra.mxu1 %v554_v44 }
  0x69   :  { %556 = vmatprep.subr.bf16.mxu1 %v757_v50 }
  0x6c   :  { %558 = vmatpush3.bf16.msra.mxu1 %v557_v47 }
  0x6d   :  { %559 = vmatprep.subr.bf16.mxu1 %v757_v50 }
  0x70   :  { %561 = vmatpush3.bf16.msra.mxu1 %v560_v51 }
  0x71   :  { %562 = vmatprep.subr.bf16.mxu1 %v757_v50 }
  0x74   :  { %564 = vmatpush3.bf16.msra.mxu1 %v563_v54 }
  0xc4   :  { %v592_v58 = vpop.permute.xlu1 %591  ;;  %v582_v59 = vpop.permute.xlu0 %581 }
  0xc5   :  { %v584_v62 = vunpack.i.h.bf16 %v582_v59  ;;  %v583_v63 = vunpack.i.l.bf16 %v582_v59  ;;  %v594_v5 = vunpack.i.h.bf16 %v592_v58  ;;  %v593_v6 = vunpack.i.l.bf16 %v592_v58  ;;  %v305_v58 = vld [vmem:[#allocation7 + $0x8] sm:$0xff] }
  0xc7   :  { %v188_v12 = vsel %vm186_vm4, %v868_v3, %v584_v62  ;;  %v187_v13 = vsel %vm186_vm4, %v866_v2, %v583_v63 }
  0xc8   :  { %v597_v60 = vpop.permute.xlu1 %596  ;;  %v587_v61 = vpop.permute.xlu0 %586  ;;  %v192_v3 = vsel %vm191_vm5, %v187_v13, %v593_v6  ;;  %v193_v2 = vsel %vm191_vm5, %v188_v12, %v594_v5 }
  0xc9   :  { %v589_v0 = vunpack.i.h.bf16 %v587_v61  ;;  %v588_v1 = vunpack.i.l.bf16 %v587_v61  ;;  %v599_v7 = vunpack.i.h.bf16 %v597_v60  ;;  %v598_v8 = vunpack.i.l.bf16 %v597_v60 }
  0xcb   :  { %v190_v14 = vsel %vm186_vm4, %v879_v9, %v589_v0  ;;  %v189_v15 = vsel %vm186_vm4, %v871_v4, %v588_v1 }
  0xcc   :  { %v607_v10 = vpop.permute.xlu1 %606  ;;  %v602_v11 = vpop.permute.xlu0 %601  ;;  %v194_v20 = vsel %vm191_vm5, %v189_v15, %v598_v8  ;;  %v195_v21 = vsel %vm191_vm5, %v190_v14, %v599_v7 }
  0xcd   :  { %v609_v16 = vunpack.i.h.bf16 %v607_v10  ;;  %v608_v17 = vunpack.i.l.bf16 %v607_v10  ;;  %v604_v18 = vunpack.i.h.bf16 %v602_v11  ;;  %v603_v19 = vunpack.i.l.bf16 %v602_v11 }
  0xcf   :  { %v199_v26 = vsel %vm196_vm6, %v194_v20, %v608_v17  ;;  %v200_v27 = vsel %vm196_vm6, %v195_v21, %v609_v16  ;;  %v197_v28 = vsel %vm196_vm6, %v192_v3, %v603_v19  ;;  %v198_v29 = vsel %vm196_vm6, %v193_v2, %v604_v18  ;;  %v465_v17 = vld [vmem:[%s974_s3] ss:$0 sm:$0xff]  ;;  %s761_s3 = smov [#allocation10]  }
  0xd0   :  { %v617_v22 = vpop.permute.xlu1 %616  ;;  %v612_v23 = vpop.permute.xlu0 %611  ;;  %s447_s27 = sshll.u32 %s761_s3, 4  ;;  %s448_s27 = int_to_ptr.vmem [resolvable:$true] %s447_s27 }
  0xd1   :  { %v619_v9 = vunpack.i.h.bf16 %v617_v22  ;;  %v618_v24 = vunpack.i.l.bf16 %v617_v22  ;;  %v614_v4 = vunpack.i.h.bf16 %v612_v23  ;;  %v613_v25 = vunpack.i.l.bf16 %v612_v23  ;;  %s717_s28 = scalar_lea.vmem %s448_s27, 32  ;;  %p722_p5 = scmp.lt.s32.totalorder %s448_s27, %s448_s27 }
  0xd2   :  { %p718_p4 = scmp.ne.s32.totalorder %s448_s27, %s717_s28  ;;  %p723_p6 = scmp.lt.s32.totalorder %s717_s28, %s717_s28 }
  0xd3   :  { %v204_v30 = vsel %vm201_vm7, %v199_v26, %v618_v24  ;;  %v205_v31 = vsel %vm201_vm7, %v200_v27, %v619_v9  ;;  %v202_v32 = vsel %vm201_vm7, %v197_v28, %v613_v25  ;;  %v203_v33 = vsel %vm201_vm7, %v198_v29, %v614_v4  ;;  %v466_v9 = vld [vmem:[%s976_s5] ss:$0 sm:$0xff] }
  0xd4   :  { %v207_v34 = vpack.c.bf16 %v205_v31, %v204_v30  ;;  %v206_v35 = vpack.c.bf16 %v203_v33, %v202_v32  ;;  %p724_p7 = por %p723_p6, %p722_p5 }
  0xd6   :  { %502 = vmatprep.mubr.msk.bf16.mxu0 %vm248_vm8, %v206_v35  ;;  %p725_p8 = pnand %p724_p7, %p718_p4 }
  0xd7   :  { %503 = vmatmul.mubr.msk.bf16.vlgmr.msra.gmra.mrb[0].mxu0 %vm248_vm8, %v207_v34 }
 0x1aa   :  { %v504_v56 = vpop.f32.mrb[0].mxu0 }
 0x1ab   :  { %v289_v59 = vpop.f32.mrb[1].mxu0  ;;  %v308_v61 = vadd.f32 %v504_v56, %v304_v57 }
 0x1ac   :  { %v505_v60 = vpop.f32.mrb[2].mxu0  ;;  %v306_v0 = vadd.f32 %v304_v57, %v289_v59 }
 0x1ad   :  { %v309_v62 = vadd.f32 %v505_v60, %v305_v58  ;;  %v292_v63 = vpop.f32.mrb[3].mxu0 }
 0x1ae   :  { %v307_v1 = vadd.f32 %v305_v58, %v292_v63 }
 0x1af   :  { %v317_v5 = vmax.f32 %v308_v61, %v309_v62 }
 0x1b0   :  { %v310_v6 = vmax.f32 %v306_v0, %v307_v1 }
 0x1b1   :  { %v318_v7 = vrot.slane %v317_v5, 4 }
 0x1b2   :  { %v311_v8 = vrot.slane %v310_v6, 4 }
 0x1b3   :  { %v319_v10 = vmax.f32 %v317_v5, %v318_v7 }
 0x1b4   :  { %v312_v11 = vmax.f32 %v310_v6, %v311_v8 }
 0x1b5   :  { %v320_v12 = vrot.slane %v319_v10, 2 }
 0x1b6   :  { %v313_v13 = vrot.slane %v312_v11, 2 }
 0x1b7   :  { %v321_v50 = vmax.f32 %v319_v10, %v320_v12 }
 0x1b8   :  { %v314_v14 = vmax.f32 %v312_v11, %v313_v13 }
 0x1b9   :  { %v322_v15 = vrot.slane %v321_v50, 1 }
 0x1ba   :  { %v315_v16 = vrot.slane %v314_v14, 1 }
 0x1bb   :  { %v323_v18 = vmax.f32 %v321_v50, %v322_v15 }
 0x1bc   :  { %v316_v19 = vmax.f32 %v314_v14, %v315_v16 }
 0x1bd   :  { %v332_v20 = vadd.f32 %v465_v17, %v323_v18 }
 0x1be   :  { %v331_v21 = vadd.f32 %v465_v17, %v316_v19 }
 0x1bf   :  { %v334_v22 = vmax.f32 %v332_v20, 0.0 }
 0x1c0   :  { %v333_v23 = vmax.f32 %v331_v21, 0.0 }
 0x1c1   :  { %v360_v3 = vrot.slane %v334_v22, 7 }
 0x1c3   :  { %v362_v2 = vsel %vm361_vm10, %v360_v3, %v333_v23 }
 0x1c4   :  { %539 = vmatmul.mubr.f32.vlgmr.msra.gmra.mrb[0].mxu1 %v362_v2 }
 0x297   :  { %v430_v24 = vpop.f32.mrb[0].mxu1 }
 0x298   :  { %v431_v4 = vadd.f32 %v466_v9, %v430_v24  ;;  %v540_v25 = vpop.f32.mrb[1].mxu1 }
 0x29a   :  { %v467_v26 = vmul.f32 -1.442695, %v431_v4 }
 0x29c   :  { %625 = vpow2.f32 %v467_v26 }
 0x2a6   :  { %v626_v27 = vpop.eup %625 }
 0x2a7   :  { %v437_v28 = vadd.f32 1.0, %v626_v27 }
 0x2a9   :  { %627 = vrcp.f32 %v437_v28 }
 0x2b3   :  { %v628_v29 = vpop.eup %627 }
 0x2b4   :  { %440 = vst [vmem:[#allocation10] sm:$0x3] %v628_v29 }
 0x2b5   :  { %728 = shalt.err (!%p725_p8)
}
 0x2b6   :  { %s729_s30 = scalar_lea.hbm %s977_s6, 32 }
 0x2b7   :  { %p730_p9 = scmp.ne.s32.totalorder %s977_s6, %s729_s30  ;;  %p733_p10 = scmp.lt.u32.totalorder %s729_s30, %s977_s6 }
 0x2b9   :  { %p735_p11 = pnand %p733_p10, %p730_p9 }
 0x2bb   :  { %738 = shalt.err (!%p735_p11)
}
 0x2bc   :  { %450 = dma.vmem_to_hbm [thread:$0]  %s448_s27, 32, %s977_s6, [#allocation4]  }
 0x2bd   :  { %745 = dma.done.wait [#allocation4], 32  }
 0x2be   :  { %746 = vsyncadd [#allocation4], 4294967264 }
 0x2bf   :  { %454 = vsyncpa [#allocation3], 1 }
 0x2c0   :  { %455 = vsyncpa [#allocation6], 1 }
 0x2c1   :  { %456 = vsyncpa [#allocation9], 1 }
 0x2c2   :  { %457 = vsyncpa [#allocation4], 1 }

</bundles_post_ra>
